<compile_context>
chip_gen: v7x
topology: tpu7x:2x2x1
jax: 0.10.0
libtpu: 0.0.40
codegen_flags: <defaults>
</compile_context>

<pallas_src>
import functools

import jax
import jax.numpy as jnp
from jax.experimental import pallas as pl
from jax.experimental.pallas import tpu as pltpu

BN_EPS = 1e-5
_LANE = 128           # lane width: Cout / K padded to multiples of this
_SUBLANE_BF16 = 16    # bf16 sublane packing: M tiles are multiples of 16


def _round_up(x, m):
    return (x + m - 1) // m * m


def _vmem_limit(nbytes_needed):
    # Generous but explicit scoped-VMEM budget; safe on v5e/v6e/v7x.
    return int(min(max(2 * nbytes_needed, 16 * 1024 * 1024), 40 * 1024 * 1024))


# ---------------------------------------------------------------------------
# Pass 1: conv GEMM + per-M-tile BN partial statistics.
# Grid: (m_tiles, k_tiles).  y_ref is resident across K and accumulated in
# place; stats_ref rows 0/1 get per-channel sum / sum-of-squares at the last
# K step (remaining rows are don't-care padding kept for an unmasked store).
# ---------------------------------------------------------------------------
def _emit_stats(y, stats_ref):
    s = jnp.sum(y, axis=0, keepdims=True)           # (1, Cout_pad) sum
    ss = jnp.sum(y * y, axis=0, keepdims=True)      # (1, Cout_pad) sumsq
    row = jax.lax.broadcasted_iota(jnp.int32, stats_ref.shape, 0)
    stats_ref[...] = jnp.where(row == 0, s, ss)     # rows >=2 unused by wrapper


def _conv_stats_kernel(p_ref, w_ref, y_ref, stats_ref, *, single_k):
    if single_k:
        # Only one K tile: write the MXU result straight through, no init/acc.
        y = jnp.dot(p_ref[...], w_ref[...], preferred_element_type=jnp.float32)
        y_ref[...] = y
        _emit_stats(y, stats_ref)
    else:
        k = pl.program_id(1)

        @pl.when(k == 0)
        def _():
            y_ref[...] = jnp.zeros_like(y_ref)

        y_ref[...] += jnp.dot(p_ref[...], w_ref[...],
                              preferred_element_type=jnp.float32)

        @pl.when(k == pl.num_programs(1) - 1)
        def _():
            _emit_stats(y_ref[...], stats_ref)


# ---------------------------------------------------------------------------
# Pass 2: y * scale + shift, ReLU.  scale/shift fold gamma/beta/mean/var.
# ---------------------------------------------------------------------------
def _bn_relu_kernel(y_ref, scale_ref, shift_ref, o_ref):
    o_ref[...] = jnp.maximum(
        y_ref[...] * scale_ref[...] + shift_ref[...], 0.0
    ).astype(o_ref.dtype)


def _im2col(x_nhwc, kh, kw, stride, padding):
    """(N, H, W, C) -> (N*OH*OW, KH*KW*C) with feature order (kh, kw, c)."""
    n, h, w, c = x_nhwc.shape
    xp = jnp.pad(x_nhwc, ((0, 0), (padding, padding), (padding, padding), (0, 0)))
    oh = (h + 2 * padding - kh) // stride + 1
    ow = (w + 2 * padding - kw) // stride + 1
    cols = []
    for i in range(kh):
        for j in range(kw):
            sl = xp[:, i:i + (oh - 1) * stride + 1:stride,
                    j:j + (ow - 1) * stride + 1:stride, :]   # (N, OH, OW, C)
            cols.append(sl)
    patches = jnp.concatenate(cols, axis=-1)                 # (N, OH, OW, KH*KW*C)
    return patches.reshape(n * oh * ow, kh * kw * c), oh, ow


@functools.partial(jax.jit, static_argnames=("stride", "padding", "tm"))
def basic_conv(x_nchw, weight_oihw, gamma, beta, *, stride=1, padding=0, tm=512):
    """Conv2d(bias=False) + BatchNorm2d(batch stats, affine) + ReLU.  NCHW in/out."""
    n, cin, h, w = x_nchw.shape
    cout, cin_w, kh, kw = weight_oihw.shape
    assert cin == cin_w, "groups != 1 not supported"   # TODO(synk): grouped conv

    # ---- im2col (XLA side). -------------------------------------------------
    # TODO(synk): for large Cin, build patches inside the kernel from shifted
    # input slices to avoid the KH*KW HBM inflation of materialized im2col.
    x_nhwc = jnp.transpose(x_nchw, (0, 2, 3, 1))
    patches, oh, ow = _im2col(x_nhwc, kh, kw, stride, padding)     # (M, K)
    m_real, k_real = patches.shape

    # ---- lane/sublane-aligned padding & tiling. -----------------------------
    cout_pad = _round_up(cout, _LANE)
    k_128 = _round_up(k_real, _LANE)
    tk = min(512, k_128)
    k_pad = _round_up(k_real, tk)
    tm = min(tm, _round_up(m_real, _SUBLANE_BF16))
    # Keep the biggest tile that fits a conservative double-buffered VMEM budget.
    while tm > 64 and 2 * (tm * tk * 2 + tk * cout_pad * 2
                           + tm * cout_pad * 4 + 8 * cout_pad * 4) > 24 * 1024 * 1024:
        tm //= 2
    tm = max(_SUBLANE_BF16, _round_up(tm, _SUBLANE_BF16))
    m_pad = _round_up(m_real, tm)
    n_m, n_k = m_pad // tm, k_pad // tk

    patches_p = jnp.pad(
        patches, ((0, m_pad - m_real), (0, k_pad - k_real))).astype(jnp.bfloat16)
    # (Cout, Cin, KH, KW) -> (KH, KW, Cin, Cout) -> (K, Cout): matches patch order.
    w_mat = jnp.transpose(weight_oihw, (2, 3, 1, 0)).reshape(k_real, cout)
    w_p = jnp.pad(
        w_mat, ((0, k_pad - k_real), (0, cout_pad - cout))).astype(jnp.bfloat16)

    # ---- Pass 1: conv GEMM + per-tile BN partials. --------------------------
    need_1 = 2 * (tm * tk * 2 + tk * cout_pad * 2
                  + tm * cout_pad * 4 + 8 * cout_pad * 4)
    bytes_1 = (patches_p.size * 2 + w_p.size * 2
               + m_pad * cout_pad * 4 + n_m * 8 * cout_pad * 4)
    kernel_1 = functools.partial(_conv_stats_kernel, single_k=(n_k == 1))
    y_flat, stats = pl.pallas_call(
        kernel_1,
        out_shape=(
            jax.ShapeDtypeStruct((m_pad, cout_pad), jnp.float32),
            jax.ShapeDtypeStruct((n_m, 8, cout_pad), jnp.float32),
        ),
        grid_spec=pltpu.PrefetchScalarGridSpec(
            num_scalar_prefetch=0,
            grid=(n_m, n_k),
            in_specs=[
                pl.BlockSpec((tm, tk), lambda mi, ki: (mi, ki)),
                pl.BlockSpec((tk, cout_pad), lambda mi, ki: (ki, 0)),
            ],
            out_specs=[
                pl.BlockSpec((tm, cout_pad), lambda mi, ki: (mi, 0)),
                pl.BlockSpec((None, 8, cout_pad), lambda mi, ki: (mi, 0, 0)),
            ],
        ),
        compiler_params=pltpu.CompilerParams(
            dimension_semantics=("parallel", "arbitrary"),
            vmem_limit_bytes=_vmem_limit(need_1),
        ),
        cost_estimate=pl.CostEstimate(
            flops=2 * m_pad * k_pad * cout_pad,
            transcendentals=0,
            bytes_accessed=bytes_1,
        ),
    )(patches_p, w_p)

    # ---- Finalize batch statistics (tiny reduction, f32, XLA side). ---------
    # Zero-padded M rows / Cout columns contribute 0 to both sums, so dividing
    # by the *real* M gives exact BatchNorm2d training-mode (biased) stats.
    sum_c = jnp.sum(stats[:, 0, :], axis=0)
    sumsq_c = jnp.sum(stats[:, 1, :], axis=0)
    inv_m = 1.0 / float(m_real)
    mean = sum_c * inv_m
    var = jnp.maximum(sumsq_c * inv_m - mean * mean, 0.0)
    inv_std = jax.lax.rsqrt(var + BN_EPS)
    gamma_p = jnp.pad(gamma.astype(jnp.float32), (0, cout_pad - cout))
    beta_p = jnp.pad(beta.astype(jnp.float32), (0, cout_pad - cout))
    scale = (gamma_p * inv_std).reshape(1, cout_pad)
    shift = (beta_p - mean * gamma_p * inv_std).reshape(1, cout_pad)

    # ---- Pass 2: normalize + affine + ReLU. ----------------------------------
    need_2 = 2 * (2 * tm * cout_pad * 4 + 2 * cout_pad * 4)
    out_flat = pl.pallas_call(
        _bn_relu_kernel,
        out_shape=jax.ShapeDtypeStruct((m_pad, cout_pad), jnp.float32),
        grid_spec=pltpu.PrefetchScalarGridSpec(
            num_scalar_prefetch=0,
            grid=(n_m,),
            in_specs=[
                pl.BlockSpec((tm, cout_pad), lambda mi: (mi, 0)),
                pl.BlockSpec((1, cout_pad), lambda mi: (0, 0)),
                pl.BlockSpec((1, cout_pad), lambda mi: (0, 0)),
            ],
            out_specs=pl.BlockSpec((tm, cout_pad), lambda mi: (mi, 0)),
        ),
        compiler_params=pltpu.CompilerParams(
            dimension_semantics=("parallel",),
            vmem_limit_bytes=_vmem_limit(need_2),
        ),
        cost_estimate=pl.CostEstimate(
            flops=2 * m_pad * cout_pad,
            transcendentals=0,
            bytes_accessed=2 * m_pad * cout_pad * 4,
        ),
    )(y_flat, scale, shift)

    out_nhwc = out_flat[:m_real, :cout].reshape(n, oh, ow, cout)
    return jnp.transpose(out_nhwc, (0, 3, 1, 2))              # back to NCHW


def _reference(x_nchw, weight_oihw, gamma, beta, stride, padding):
    # Reference rounds the conv inputs to bf16 (matching the kernel's MXU feed)
    # but accumulates and normalizes in f32, exactly like the Pallas path.
    y = jax.lax.conv_general_dilated(
        x_nchw.astype(jnp.bfloat16), weight_oihw.astype(jnp.bfloat16),
        window_strides=(stride, stride),
        padding=((padding, padding), (padding, padding)),
        dimension_numbers=("NCHW", "OIHW", "NCHW"),
        preferred_element_type=jnp.float32,
    )
    mean = jnp.mean(y, axis=(0, 2, 3), keepdims=True)
    var = jnp.mean((y - mean) ** 2, axis=(0, 2, 3), keepdims=True)
    y = (y - mean) / jnp.sqrt(var + BN_EPS)
    y = y * gamma.reshape(1, -1, 1, 1) + beta.reshape(1, -1, 1, 1)
    return jnp.maximum(y, 0.0)


if __name__ == "__main__":
    # BasicConv(in_planes=4, out_planes=8, kernel_size=3, stride=1, padding=1,
    #           relu=True, bn=True, bias=False)
    N, CIN, H, W = 2, 4, 16, 16
    COUT, KSIZE, STRIDE, PAD = 8, 3, 1, 1

    key = jax.random.PRNGKey(0)
    kx, kw_ = jax.random.split(key)
    x = jax.random.normal(kx, (N, CIN, H, W), dtype=jnp.float32)
    fan_in = CIN * KSIZE * KSIZE
    weight = jax.random.normal(kw_, (COUT, CIN, KSIZE, KSIZE), dtype=jnp.float32)
    weight = weight * (1.0 / jnp.sqrt(fan_in))
    gamma = 1.0 + 0.1 * jnp.arange(COUT, dtype=jnp.float32)   # deterministic BN affine
    beta = 0.05 * jnp.arange(COUT, dtype=jnp.float32)

    out = basic_conv(x, weight, gamma, beta, stride=STRIDE, padding=PAD)
    out = jax.block_until_ready(out)

    ref = _reference(x, weight, gamma, beta, STRIDE, PAD)
    assert out.shape == (N, COUT, H, W), out.shape
    max_err = float(jnp.max(jnp.abs(out - ref)))
    assert jnp.allclose(out, ref, atol=2e-2, rtol=2e-2), max_err
    print("KERNEL_OK")
</pallas_src>

<mosaic_0001>
module attributes {stable_mosaic.version = 11 : i64} {
  func.func @_conv_stats_kernel(%arg0: i32, %arg1: i32, %arg2: memref<512x128xbf16, #tpu.memory_space<vmem>>, %arg3: memref<128x128xbf16, #tpu.memory_space<vmem>>, %arg4: memref<512x128xf32, #tpu.memory_space<vmem>>, %arg5: memref<1x8x128xf32, #tpu.memory_space<vmem>>) attributes {dimension_semantics = [#tpu.dimension_semantics<parallel>, #tpu.dimension_semantics<arbitrary>], iteration_bounds = array<i64: 1, 1>, scalar_prefetch = 0 : i64, scratch_operands = 0 : i64, tpu.core_type = #tpu.core_type<tc>, window_params = [{transform_indices = @transform_0, window_bounds = array<i64: 512, 128>}, {transform_indices = @transform_1, window_bounds = array<i64: 128, 128>}, {transform_indices = @transform_2, window_bounds = array<i64: 512, 128>}, {transform_indices = @transform_3, window_bounds = array<i64: 1, 8, 128>}]} {
    %c0 = arith.constant 0 : index
    %c0_0 = arith.constant 0 : index
    %0 = vector.load %arg2[%c0, %c0_0] : memref<512x128xbf16, #tpu.memory_space<vmem>>, vector<512x128xbf16>
    %c0_1 = arith.constant 0 : index
    %c0_2 = arith.constant 0 : index
    %1 = vector.load %arg3[%c0_1, %c0_2] : memref<128x128xbf16, #tpu.memory_space<vmem>>, vector<128x128xbf16>
    %cst = arith.constant dense<0.000000e+00> : vector<512x128xf32>
    %2 = tpu.matmul %0, %1, %cst {dimension_numbers = #tpu.dot_dimension_numbers<[1], [0], [0], [1], [0, 0, 1, 1], [], []>} : vector<512x128xbf16>, vector<128x128xbf16>, vector<512x128xf32> -> vector<512x128xf32>
    %c0_3 = arith.constant 0 : index
    %c0_4 = arith.constant 0 : index
    %3 = vector.load %arg4[%c0_3, %c0_4] : memref<512x128xf32, #tpu.memory_space<vmem>>, vector<512x128xf32>
    tpu.vector_store %arg4[%c0_3, %c0_4], %2 {strides = array<i32>} : memref<512x128xf32, #tpu.memory_space<vmem>>, vector<512x128xf32>,
    %cst_5 = arith.constant dense<0.000000e+00> : vector<128xf32>
    %4 = vector.multi_reduction <add>, %2, %cst_5 [0] : vector<512x128xf32> to vector<128xf32>
    %5 = vector.shape_cast %4 : vector<128xf32> to vector<1x128xf32>
    %6 = arith.mulf %2, %2 : vector<512x128xf32>
    %cst_6 = arith.constant dense<0.000000e+00> : vector<128xf32>
    %7 = vector.multi_reduction <add>, %6, %cst_6 [0] : vector<512x128xf32> to vector<128xf32>
    %8 = vector.shape_cast %7 : vector<128xf32> to vector<1x128xf32>
    %9 = tpu.iota {dimensions = array<i32: 0>} : vector<8x128xi32>
    %c0_i32 = arith.constant 0 : i32
    %10 = vector.broadcast %c0_i32 : i32 to vector<8x128xi32>
    %11 = arith.cmpi eq, %9, %10 : vector<8x128xi32>
    %12 = vector.shape_cast %5 : vector<1x128xf32> to vector<1x128xf32>
    %13 = vector.broadcast %12 : vector<1x128xf32> to vector<8x128xf32>
    %14 = vector.shape_cast %8 : vector<1x128xf32> to vector<1x128xf32>
    %15 = vector.broadcast %14 : vector<1x128xf32> to vector<8x128xf32>
    %16 = arith.select %11, %13, %15 : vector<8x128xi1>, vector<8x128xf32>
    %c0_7 = arith.constant 0 : index
    %c0_8 = arith.constant 0 : index
    %c0_9 = arith.constant 0 : index
    %17 = vector.load %arg5[%c0_7, %c0_8, %c0_9] : memref<1x8x128xf32, #tpu.memory_space<vmem>>, vector<1x8x128xf32>
    %18 = vector.shape_cast %17 : vector<1x8x128xf32> to vector<8x128xf32>
    %19 = vector.shape_cast %16 : vector<8x128xf32> to vector<1x8x128xf32>
    tpu.vector_store %arg5[%c0_7, %c0_8, %c0_9], %19 {strides = array<i32>} : memref<1x8x128xf32, #tpu.memory_space<vmem>>, vector<1x8x128xf32>,
    return
  }
  func.func @transform_0(%arg0: i32, %arg1: i32) -> (i32, i32) {
    %c0_i32 = arith.constant 0 : i32
    return %arg0, %arg1 : i32, i32
  }
  func.func @transform_1(%arg0: i32, %arg1: i32) -> (i32, i32) {
    %c0_i32 = arith.constant 0 : i32
    %c0_i32_0 = arith.constant 0 : i32
    return %arg1, %c0_i32 : i32, i32
  }
  func.func @transform_2(%arg0: i32, %arg1: i32) -> (i32, i32) {
    %c0_i32 = arith.constant 0 : i32
    %c0_i32_0 = arith.constant 0 : i32
    return %arg0, %c0_i32 : i32, i32
  }
  func.func @transform_3(%arg0: i32, %arg1: i32) -> (i32, i32, i32) {
    %c0_i32 = arith.constant 0 : i32
    %c0_i32_0 = arith.constant 0 : i32
    %c0_i32_1 = arith.constant 0 : i32
    return %arg0, %c0_i32, %c0_i32_0 : i32, i32, i32
  }
}

module attributes {stable_mosaic.version = 11 : i64} {
  func.func @_bn_relu_kernel(%arg0: i32, %arg1: memref<512x128xf32, #tpu.memory_space<vmem>>, %arg2: memref<1x128xf32, #tpu.memory_space<vmem>>, %arg3: memref<1x128xf32, #tpu.memory_space<vmem>>, %arg4: memref<512x128xf32, #tpu.memory_space<vmem>>) attributes {dimension_semantics = [#tpu.dimension_semantics<parallel>], iteration_bounds = array<i64: 1>, scalar_prefetch = 0 : i64, scratch_operands = 0 : i64, tpu.core_type = #tpu.core_type<tc>, window_params = [{transform_indices = @transform_0, window_bounds = array<i64: 512, 128>}, {pipeline_mode = #tpu.pipeline_mode<synchronous>, transform_indices = @transform_1, window_bounds = array<i64: 1, 128>}, {pipeline_mode = #tpu.pipeline_mode<synchronous>, transform_indices = @transform_2, window_bounds = array<i64: 1, 128>}, {transform_indices = @transform_3, window_bounds = array<i64: 512, 128>}]} {
    %c0 = arith.constant 0 : index
    %c0_0 = arith.constant 0 : index
    %0 = vector.load %arg1[%c0, %c0_0] : memref<512x128xf32, #tpu.memory_space<vmem>>, vector<512x128xf32>
    %c0_1 = arith.constant 0 : index
    %c0_2 = arith.constant 0 : index
    %1 = vector.load %arg2[%c0_1, %c0_2] : memref<1x128xf32, #tpu.memory_space<vmem>>, vector<1x128xf32>
    %2 = vector.broadcast %1 : vector<1x128xf32> to vector<512x128xf32>
    %3 = arith.mulf %0, %2 : vector<512x128xf32>
    %c0_3 = arith.constant 0 : index
    %c0_4 = arith.constant 0 : index
    %4 = vector.load %arg3[%c0_3, %c0_4] : memref<1x128xf32, #tpu.memory_space<vmem>>, vector<1x128xf32>
    %5 = vector.broadcast %4 : vector<1x128xf32> to vector<512x128xf32>
    %6 = arith.addf %3, %5 : vector<512x128xf32>
    %cst = arith.constant 0.000000e+00 : f32
    %7 = vector.broadcast %cst : f32 to vector<512x128xf32>
    %8 = arith.maximumf %6, %7 : vector<512x128xf32>
    %c0_5 = arith.constant 0 : index
    %c0_6 = arith.constant 0 : index
    %9 = vector.load %arg4[%c0_5, %c0_6] : memref<512x128xf32, #tpu.memory_space<vmem>>, vector<512x128xf32>
    tpu.vector_store %arg4[%c0_5, %c0_6], %8 {strides = array<i32>} : memref<512x128xf32, #tpu.memory_space<vmem>>, vector<512x128xf32>,
    return
  }
  func.func @transform_0(%arg0: i32) -> (i32, i32) {
    %c0_i32 = arith.constant 0 : i32
    %c0_i32_0 = arith.constant 0 : i32
    return %arg0, %c0_i32 : i32, i32
  }
  func.func @transform_1(%arg0: i32) -> (i32, i32) {
    %c0_i32 = arith.constant 0 : i32
    %c0_i32_0 = arith.constant 0 : i32
    %c0_i32_1 = arith.constant 0 : i32
    return %c0_i32, %c0_i32_0 : i32, i32
  }
  func.func @transform_2(%arg0: i32) -> (i32, i32) {
    %c0_i32 = arith.constant 0 : i32
    %c0_i32_0 = arith.constant 0 : i32
    %c0_i32_1 = arith.constant 0 : i32
    return %c0_i32, %c0_i32_0 : i32, i32
  }
  func.func @transform_3(%arg0: i32) -> (i32, i32) {
    %c0_i32 = arith.constant 0 : i32
    %c0_i32_0 = arith.constant 0 : i32
    return %arg0, %c0_i32 : i32, i32
  }
}

</mosaic_0001>

<bundles_post_ra>
// kernel: basic_conv.3
= control target key start
LH: loop header
LB: loop body
LE: loop exit
PB: predicated region body
PF: predicated region fallthrough
CT: control target
= control target key end

     0   :  { %s896_s0 = inlined_call_operand.vmem [shape: f32[512,128], index: 0, kind: input, shape index: {}]   ;;  %s897_s1 = inlined_call_operand.vmem [shape: f32[1,128], index: 1, kind: input, shape index: {}]   ;;  %s898_s2 = inlined_call_operand.vmem [shape: f32[1,128], index: 2, kind: input, shape index: {}]   ;;  %s899_s3 = inlined_call_operand.vmem [shape: f32[512,128], index: 3, kind: output, shape index: {}]  }
   0x1   :  { %v14_v0 = vld [vmem:[%s896_s0] sm:$0xff]  ;;  %v15_v4 = vld [vmem:[%s896_s0 + $0x8] sm:$0xff]  ;;  %v16_v5 = vld [vmem:[%s896_s0 + $0x10] sm:$0xff] }
   0x2   :  { %v380_v1 = vld [vmem:[%s897_s1] ss:$0 sm:$0xff]  ;;  %v17_v6 = vld [vmem:[%s896_s0 + $0x18] sm:$0xff]  ;;  %v19_v11 = vld [vmem:[%s896_s0 + $0x28] sm:$0xff] }
   0x3   :  { %v385_v2 = vld [vmem:[%s898_s2] ss:$0 sm:$0xff]  ;;  %v85_v3 = vmul.f32 %v380_v1, %v14_v0  ;;  %v86_v7 = vmul.f32 %v380_v1, %v15_v4  ;;  %v87_v8 = vmul.f32 %v380_v1, %v16_v5  ;;  %v88_v9 = vmul.f32 %v380_v1, %v17_v6  ;;  %v20_v12 = vld [vmem:[%s896_s0 + $0x30] sm:$0xff]  ;;  %v21_v17 = vld [vmem:[%s896_s0 + $0x38] sm:$0xff] }
   0x4   :  { %v18_v10 = vld [vmem:[%s896_s0 + $0x20] sm:$0xff]  ;;  %v90_v15 = vmul.f32 %v380_v1, %v19_v11  ;;  %v91_v16 = vmul.f32 %v380_v1, %v20_v12  ;;  %v92_v21 = vmul.f32 %v380_v1, %v21_v17  ;;  %v23_v27 = vld [vmem:[%s896_s0 + $0x48] sm:$0xff]  ;;  %v24_v28 = vld [vmem:[%s896_s0 + $0x50] sm:$0xff] }
   0x5   :  { %v156_v13 = vadd.f32 %v385_v2, %v85_v3  ;;  %v89_v14 = vmul.f32 %v380_v1, %v18_v10  ;;  %v157_v18 = vadd.f32 %v385_v2, %v86_v7  ;;  %v158_v19 = vadd.f32 %v385_v2, %v87_v8  ;;  %v22_v22 = vld [vmem:[%s896_s0 + $0x40] sm:$0xff]  ;;  %v25_v29 = vld [vmem:[%s896_s0 + $0x58] sm:$0xff]  ;;  %v27_v35 = vld [vmem:[%s896_s0 + $0x68] sm:$0xff] }
   0x6   :  { %v159_v20 = vadd.f32 %v385_v2, %v88_v9  ;;  %v161_v25 = vadd.f32 %v385_v2, %v90_v15  ;;  %v162_v26 = vadd.f32 %v385_v2, %v91_v16  ;;  %v163_v33 = vadd.f32 %v385_v2, %v92_v21  ;;  %v26_v34 = vld [vmem:[%s896_s0 + $0x60] sm:$0xff]  ;;  %v28_v36 = vld [vmem:[%s896_s0 + $0x70] sm:$0xff]  ;;  %v29_v41 = vld [vmem:[%s896_s0 + $0x78] sm:$0xff] }
   0x7   :  { %v220_v23 = vmax.f32 %v156_v13, 0.0  ;;  %v160_v24 = vadd.f32 %v385_v2, %v89_v14  ;;  %v221_v30 = vmax.f32 %v157_v18, 0.0  ;;  %v222_v31 = vmax.f32 %v158_v19, 0.0  ;;  %v30_v54 = vld [vmem:[%s896_s0 + $0x80] sm:$0xff]  ;;  %v31_v59 = vld [vmem:[%s896_s0 + $0x88] sm:$0xff]  ;;  %v32_v60 = vld [vmem:[%s896_s0 + $0x90] sm:$0xff] }
   0x8   :  { %v223_v32 = vmax.f32 %v159_v20, 0.0  ;;  %v225_v38 = vmax.f32 %v161_v25, 0.0  ;;  %v226_v39 = vmax.f32 %v162_v26, 0.0  ;;  %v93_v40 = vmul.f32 %v380_v1, %v22_v22  ;;  %v33_v61 = vld [vmem:[%s896_s0 + $0x98] sm:$0xff]  ;;  %v34_v4 = vld [vmem:[%s896_s0 + $0xa0] sm:$0xff]  ;;  %v35_v5 = vld [vmem:[%s896_s0 + $0xa8] sm:$0xff] }
   0x9   :  { %284 = vst [vmem:[%s899_s3] sm:$0xff] %v220_v23  ;;  %v224_v37 = vmax.f32 %v160_v24, 0.0  ;;  %285 = vst [vmem:[%s899_s3 + $0x8] sm:$0xff] %v221_v30  ;;  %v227_v42 = vmax.f32 %v163_v33, 0.0  ;;  %v94_v43 = vmul.f32 %v380_v1, %v23_v27  ;;  %v95_v44 = vmul.f32 %v380_v1, %v24_v28  ;;  %v36_v6 = vld [vmem:[%s896_s0 + $0xb0] sm:$0xff]  ;;  %v37_v11 = vld [vmem:[%s896_s0 + $0xb8] sm:$0xff] }
   0xa   :  { %286 = vst [vmem:[%s899_s3 + $0x10] sm:$0xff] %v222_v31  ;;  %287 = vst [vmem:[%s899_s3 + $0x18] sm:$0xff] %v223_v32  ;;  %v96_v45 = vmul.f32 %v380_v1, %v25_v29  ;;  %v164_v46 = vadd.f32 %v385_v2, %v93_v40  ;;  %v97_v47 = vmul.f32 %v380_v1, %v26_v34  ;;  %v38_v24 = vld [vmem:[%s896_s0 + $0xc0] sm:$0xff]  ;;  %v39_v29 = vld [vmem:[%s896_s0 + $0xc8] sm:$0xff] }
   0xb   :  { %288 = vst [vmem:[%s899_s3 + $0x20] sm:$0xff] %v224_v37  ;;  %289 = vst [vmem:[%s899_s3 + $0x28] sm:$0xff] %v225_v38  ;;  %v98_v48 = vmul.f32 %v380_v1, %v27_v35  ;;  %v99_v49 = vmul.f32 %v380_v1, %v28_v36  ;;  %v165_v50 = vadd.f32 %v385_v2, %v94_v43  ;;  %v40_v30 = vld [vmem:[%s896_s0 + $0xd0] sm:$0xff]  ;;  %v41_v31 = vld [vmem:[%s896_s0 + $0xd8] sm:$0xff] }
   0xc   :  { %290 = vst [vmem:[%s899_s3 + $0x30] sm:$0xff] %v226_v39  ;;  %291 = vst [vmem:[%s899_s3 + $0x38] sm:$0xff] %v227_v42  ;;  %v166_v51 = vadd.f32 %v385_v2, %v95_v44  ;;  %v167_v52 = vadd.f32 %v385_v2, %v96_v45  ;;  %v100_v53 = vmul.f32 %v380_v1, %v29_v41  ;;  %v228_v55 = vmax.f32 %v164_v46, 0.0  ;;  %v42_v36 = vld [vmem:[%s896_s0 + $0xe0] sm:$0xff]  ;;  %v43_v37 = vld [vmem:[%s896_s0 + $0xe8] sm:$0xff] }
   0xd   :  { %v168_v56 = vadd.f32 %v385_v2, %v97_v47  ;;  %v169_v57 = vadd.f32 %v385_v2, %v98_v48  ;;  %v170_v58 = vadd.f32 %v385_v2, %v99_v49  ;;  %v229_v62 = vmax.f32 %v165_v50, 0.0  ;;  %v44_v38 = vld [vmem:[%s896_s0 + $0xf0] sm:$0xff]  ;;  %v45_v43 = vld [vmem:[%s896_s0 + $0xf8] sm:$0xff] }
   0xe   :  { %v230_v63 = vmax.f32 %v166_v51, 0.0  ;;  %v231_v0 = vmax.f32 %v167_v52, 0.0  ;;  %v171_v3 = vadd.f32 %v385_v2, %v100_v53  ;;  %292 = vst [vmem:[%s899_s3 + $0x40] sm:$0xff] %v228_v55  ;;  %v101_v10 = vmul.f32 %v380_v1, %v30_v54 }
   0xf   :  { %v232_v7 = vmax.f32 %v168_v56, 0.0  ;;  %v233_v8 = vmax.f32 %v169_v57, 0.0  ;;  %v234_v9 = vmax.f32 %v170_v58, 0.0  ;;  %293 = vst [vmem:[%s899_s3 + $0x48] sm:$0xff] %v229_v62  ;;  %v102_v13 = vmul.f32 %v380_v1, %v31_v59  ;;  %v46_v56 = vld [vmem:[%s896_s0 + $0x100] sm:$0xff]  ;;  %v48_v62 = vld [vmem:[%s896_s0 + $0x110] sm:$0xff] }
  0x10   :  { %294 = vst [vmem:[%s899_s3 + $0x50] sm:$0xff] %v230_v63  ;;  %295 = vst [vmem:[%s899_s3 + $0x58] sm:$0xff] %v231_v0  ;;  %v235_v12 = vmax.f32 %v171_v3, 0.0  ;;  %v103_v14 = vmul.f32 %v380_v1, %v32_v60  ;;  %v104_v15 = vmul.f32 %v380_v1, %v33_v61  ;;  %v172_v16 = vadd.f32 %v385_v2, %v101_v10  ;;  %v47_v61 = vld [vmem:[%s896_s0 + $0x108] sm:$0xff]  ;;  %v49_v63 = vld [vmem:[%s896_s0 + $0x118] sm:$0xff] }
  0x11   :  { %296 = vst [vmem:[%s899_s3 + $0x60] sm:$0xff] %v232_v7  ;;  %297 = vst [vmem:[%s899_s3 + $0x68] sm:$0xff] %v233_v8  ;;  %v105_v17 = vmul.f32 %v380_v1, %v34_v4  ;;  %v106_v18 = vmul.f32 %v380_v1, %v35_v5  ;;  %v107_v19 = vmul.f32 %v380_v1, %v36_v6  ;;  %v50_v6 = vld [vmem:[%s896_s0 + $0x120] sm:$0xff]  ;;  %v51_v7 = vld [vmem:[%s896_s0 + $0x128] sm:$0xff] }
  0x12   :  { %298 = vst [vmem:[%s899_s3 + $0x70] sm:$0xff] %v234_v9  ;;  %299 = vst [vmem:[%s899_s3 + $0x78] sm:$0xff] %v235_v12  ;;  %v173_v20 = vadd.f32 %v385_v2, %v102_v13  ;;  %v174_v21 = vadd.f32 %v385_v2, %v103_v14  ;;  %v175_v22 = vadd.f32 %v385_v2, %v104_v15  ;;  %v236_v25 = vmax.f32 %v172_v16, 0.0  ;;  %v52_v8 = vld [vmem:[%s896_s0 + $0x130] sm:$0xff]  ;;  %v53_v13 = vld [vmem:[%s896_s0 + $0x138] sm:$0xff] }
  0x13   :  { %v108_v23 = vmul.f32 %v380_v1, %v37_v11  ;;  %v176_v26 = vadd.f32 %v385_v2, %v105_v17  ;;  %v177_v27 = vadd.f32 %v385_v2, %v106_v18  ;;  %v178_v28 = vadd.f32 %v385_v2, %v107_v19 }
  0x14   :  { %v237_v32 = vmax.f32 %v173_v20, 0.0  ;;  %v238_v33 = vmax.f32 %v174_v21, 0.0  ;;  %v239_v34 = vmax.f32 %v175_v22, 0.0  ;;  %300 = vst [vmem:[%s899_s3 + $0x80] sm:$0xff] %v236_v25  ;;  %v109_v42 = vmul.f32 %v380_v1, %v38_v24 }
  0x15   :  { %v179_v35 = vadd.f32 %v385_v2, %v108_v23  ;;  %v240_v39 = vmax.f32 %v176_v26, 0.0  ;;  %v241_v40 = vmax.f32 %v177_v27, 0.0  ;;  %v242_v41 = vmax.f32 %v178_v28, 0.0  ;;  %v54_v26 = vld [vmem:[%s896_s0 + $0x140] sm:$0xff] }
  0x16   :  { %301 = vst [vmem:[%s899_s3 + $0x88] sm:$0xff] %v237_v32  ;;  %302 = vst [vmem:[%s899_s3 + $0x90] sm:$0xff] %v238_v33  ;;  %v110_v45 = vmul.f32 %v380_v1, %v39_v29  ;;  %v111_v46 = vmul.f32 %v380_v1, %v40_v30  ;;  %v112_v47 = vmul.f32 %v380_v1, %v41_v31  ;;  %v55_v31 = vld [vmem:[%s896_s0 + $0x148] sm:$0xff]  ;;  %v56_v32 = vld [vmem:[%s896_s0 + $0x150] sm:$0xff] }
  0x17   :  { %303 = vst [vmem:[%s899_s3 + $0x98] sm:$0xff] %v239_v34  ;;  %v243_v44 = vmax.f32 %v179_v35, 0.0  ;;  %304 = vst [vmem:[%s899_s3 + $0xa0] sm:$0xff] %v240_v39  ;;  %v180_v48 = vadd.f32 %v385_v2, %v109_v42  ;;  %v113_v49 = vmul.f32 %v380_v1, %v42_v36  ;;  %v114_v50 = vmul.f32 %v380_v1, %v43_v37  ;;  %v57_v33 = vld [vmem:[%s896_s0 + $0x158] sm:$0xff]  ;;  %v59_v39 = vld [vmem:[%s896_s0 + $0x168] sm:$0xff] }
  0x18   :  { %305 = vst [vmem:[%s899_s3 + $0xa8] sm:$0xff] %v241_v40  ;;  %306 = vst [vmem:[%s899_s3 + $0xb0] sm:$0xff] %v242_v41  ;;  %v115_v51 = vmul.f32 %v380_v1, %v44_v38  ;;  %v181_v52 = vadd.f32 %v385_v2, %v110_v45  ;;  %v182_v53 = vadd.f32 %v385_v2, %v111_v46  ;;  %v58_v38 = vld [vmem:[%s896_s0 + $0x160] sm:$0xff]  ;;  %v60_v40 = vld [vmem:[%s896_s0 + $0x170] sm:$0xff] }
  0x19   :  { %307 = vst [vmem:[%s899_s3 + $0xb8] sm:$0xff] %v243_v44  ;;  %v183_v54 = vadd.f32 %v385_v2, %v112_v47  ;;  %v116_v55 = vmul.f32 %v380_v1, %v45_v43  ;;  %v244_v57 = vmax.f32 %v180_v48, 0.0  ;;  %v184_v58 = vadd.f32 %v385_v2, %v113_v49  ;;  %v61_v45 = vld [vmem:[%s896_s0 + $0x178] sm:$0xff] }
  0x1a   :  { %v185_v59 = vadd.f32 %v385_v2, %v114_v50  ;;  %v186_v60 = vadd.f32 %v385_v2, %v115_v51  ;;  %v245_v0 = vmax.f32 %v181_v52, 0.0  ;;  %v246_v3 = vmax.f32 %v182_v53, 0.0 }
  0x1b   :  { %v247_v4 = vmax.f32 %v183_v54, 0.0  ;;  %v187_v5 = vadd.f32 %v385_v2, %v116_v55  ;;  %308 = vst [vmem:[%s899_s3 + $0xc0] sm:$0xff] %v244_v57  ;;  %v248_v9 = vmax.f32 %v184_v58, 0.0  ;;  %v117_v12 = vmul.f32 %v380_v1, %v46_v56  ;;  %v62_v58 = vld [vmem:[%s896_s0 + $0x180] sm:$0xff] }
  0x1c   :  { %v249_v10 = vmax.f32 %v185_v59, 0.0  ;;  %v250_v11 = vmax.f32 %v186_v60, 0.0  ;;  %309 = vst [vmem:[%s899_s3 + $0xc8] sm:$0xff] %v245_v0  ;;  %310 = vst [vmem:[%s899_s3 + $0xd0] sm:$0xff] %v246_v3  ;;  %v118_v15 = vmul.f32 %v380_v1, %v47_v61  ;;  %v119_v16 = vmul.f32 %v380_v1, %v48_v62  ;;  %v64_v0 = vld [vmem:[%s896_s0 + $0x190] sm:$0xff]  ;;  %v65_v3 = vld [vmem:[%s896_s0 + $0x198] sm:$0xff] }
  0x1d   :  { %311 = vst [vmem:[%s899_s3 + $0xd8] sm:$0xff] %v247_v4  ;;  %v251_v14 = vmax.f32 %v187_v5, 0.0  ;;  %v120_v17 = vmul.f32 %v380_v1, %v49_v63  ;;  %312 = vst [vmem:[%s899_s3 + $0xe0] sm:$0xff] %v248_v9  ;;  %v188_v18 = vadd.f32 %v385_v2, %v117_v12  ;;  %v121_v19 = vmul.f32 %v380_v1, %v50_v6  ;;  %v63_v63 = vld [vmem:[%s896_s0 + $0x188] sm:$0xff] }
  0x1e   :  { %313 = vst [vmem:[%s899_s3 + $0xe8] sm:$0xff] %v249_v10  ;;  %314 = vst [vmem:[%s899_s3 + $0xf0] sm:$0xff] %v250_v11  ;;  %v122_v20 = vmul.f32 %v380_v1, %v51_v7  ;;  %v123_v21 = vmul.f32 %v380_v1, %v52_v8  ;;  %v189_v22 = vadd.f32 %v385_v2, %v118_v15  ;;  %v66_v8 = vld [vmem:[%s896_s0 + $0x1a0] sm:$0xff]  ;;  %v67_v9 = vld [vmem:[%s896_s0 + $0x1a8] sm:$0xff] }
  0x1f   :  { %315 = vst [vmem:[%s899_s3 + $0xf8] sm:$0xff] %v251_v14  ;;  %v190_v23 = vadd.f32 %v385_v2, %v119_v16  ;;  %v191_v24 = vadd.f32 %v385_v2, %v120_v17  ;;  %v124_v25 = vmul.f32 %v380_v1, %v53_v13  ;;  %v252_v27 = vmax.f32 %v188_v18, 0.0  ;;  %v68_v10 = vld [vmem:[%s896_s0 + $0x1b0] sm:$0xff]  ;;  %v69_v15 = vld [vmem:[%s896_s0 + $0x1b8] sm:$0xff] }
  0x20   :  { %v192_v28 = vadd.f32 %v385_v2, %v121_v19  ;;  %v193_v29 = vadd.f32 %v385_v2, %v122_v20  ;;  %v194_v30 = vadd.f32 %v385_v2, %v123_v21  ;;  %v253_v34 = vmax.f32 %v189_v22, 0.0 }
  0x21   :  { %v254_v35 = vmax.f32 %v190_v23, 0.0  ;;  %v255_v36 = vmax.f32 %v191_v24, 0.0  ;;  %v195_v37 = vadd.f32 %v385_v2, %v124_v25  ;;  %316 = vst [vmem:[%s899_s3 + $0x100] sm:$0xff] %v252_v27  ;;  %v125_v44 = vmul.f32 %v380_v1, %v54_v26 }
  0x22   :  { %v256_v41 = vmax.f32 %v192_v28, 0.0  ;;  %v257_v42 = vmax.f32 %v193_v29, 0.0  ;;  %v258_v43 = vmax.f32 %v194_v30, 0.0  ;;  %317 = vst [vmem:[%s899_s3 + $0x108] sm:$0xff] %v253_v34  ;;  %v126_v47 = vmul.f32 %v380_v1, %v55_v31  ;;  %v70_v28 = vld [vmem:[%s896_s0 + $0x1c0] sm:$0xff]  ;;  %v72_v34 = vld [vmem:[%s896_s0 + $0x1d0] sm:$0xff] }
  0x23   :  { %318 = vst [vmem:[%s899_s3 + $0x110] sm:$0xff] %v254_v35  ;;  %319 = vst [vmem:[%s899_s3 + $0x118] sm:$0xff] %v255_v36  ;;  %v259_v46 = vmax.f32 %v195_v37, 0.0  ;;  %v127_v48 = vmul.f32 %v380_v1, %v56_v32  ;;  %v128_v49 = vmul.f32 %v380_v1, %v57_v33  ;;  %v196_v50 = vadd.f32 %v385_v2, %v125_v44  ;;  %v71_v33 = vld [vmem:[%s896_s0 + $0x1c8] sm:$0xff]  ;;  %v73_v35 = vld [vmem:[%s896_s0 + $0x1d8] sm:$0xff] }
  0x24   :  { %320 = vst [vmem:[%s899_s3 + $0x120] sm:$0xff] %v256_v41  ;;  %321 = vst [vmem:[%s899_s3 + $0x128] sm:$0xff] %v257_v42  ;;  %v129_v51 = vmul.f32 %v380_v1, %v58_v38  ;;  %v130_v52 = vmul.f32 %v380_v1, %v59_v39  ;;  %v131_v53 = vmul.f32 %v380_v1, %v60_v40  ;;  %v74_v40 = vld [vmem:[%s896_s0 + $0x1e0] sm:$0xff]  ;;  %v75_v41 = vld [vmem:[%s896_s0 + $0x1e8] sm:$0xff] }
  0x25   :  { %322 = vst [vmem:[%s899_s3 + $0x130] sm:$0xff] %v258_v43  ;;  %323 = vst [vmem:[%s899_s3 + $0x138] sm:$0xff] %v259_v46  ;;  %v197_v54 = vadd.f32 %v385_v2, %v126_v47  ;;  %v198_v55 = vadd.f32 %v385_v2, %v127_v48  ;;  %v199_v56 = vadd.f32 %v385_v2, %v128_v49  ;;  %v260_v59 = vmax.f32 %v196_v50, 0.0  ;;  %v76_v42 = vld [vmem:[%s896_s0 + $0x1f0] sm:$0xff]  ;;  %v77_v47 = vld [vmem:[%s896_s0 + $0x1f8] sm:$0xff] }
  0x26   :  { %v132_v57 = vmul.f32 %v380_v1, %v61_v45  ;;  %v200_v60 = vadd.f32 %v385_v2, %v129_v51  ;;  %v201_v61 = vadd.f32 %v385_v2, %v130_v52  ;;  %v202_v62 = vadd.f32 %v385_v2, %v131_v53 }
  0x27   :  { %v261_v4 = vmax.f32 %v197_v54, 0.0  ;;  %v262_v5 = vmax.f32 %v198_v55, 0.0  ;;  %v263_v6 = vmax.f32 %v199_v56, 0.0  ;;  %324 = vst [vmem:[%s899_s3 + $0x140] sm:$0xff] %v260_v59  ;;  %v133_v14 = vmul.f32 %v380_v1, %v62_v58 }
  0x28   :  { %v203_v7 = vadd.f32 %v385_v2, %v132_v57  ;;  %v264_v11 = vmax.f32 %v200_v60, 0.0  ;;  %v265_v12 = vmax.f32 %v201_v61, 0.0  ;;  %v266_v13 = vmax.f32 %v202_v62, 0.0 }
  0x29   :  { %325 = vst [vmem:[%s899_s3 + $0x148] sm:$0xff] %v261_v4  ;;  %326 = vst [vmem:[%s899_s3 + $0x150] sm:$0xff] %v262_v5  ;;  %v134_v17 = vmul.f32 %v380_v1, %v63_v63  ;;  %v135_v18 = vmul.f32 %v380_v1, %v64_v0  ;;  %v136_v19 = vmul.f32 %v380_v1, %v65_v3 }
  0x2a   :  { %327 = vst [vmem:[%s899_s3 + $0x158] sm:$0xff] %v263_v6  ;;  %v267_v16 = vmax.f32 %v203_v7, 0.0  ;;  %328 = vst [vmem:[%s899_s3 + $0x160] sm:$0xff] %v264_v11  ;;  %v204_v20 = vadd.f32 %v385_v2, %v133_v14  ;;  %v137_v21 = vmul.f32 %v380_v1, %v66_v8  ;;  %v138_v22 = vmul.f32 %v380_v1, %v67_v9 }
  0x2b   :  { %329 = vst [vmem:[%s899_s3 + $0x168] sm:$0xff] %v265_v12  ;;  %330 = vst [vmem:[%s899_s3 + $0x170] sm:$0xff] %v266_v13  ;;  %v139_v23 = vmul.f32 %v380_v1, %v68_v10  ;;  %v205_v24 = vadd.f32 %v385_v2, %v134_v17  ;;  %v206_v25 = vadd.f32 %v385_v2, %v135_v18 }
  0x2c   :  { %331 = vst [vmem:[%s899_s3 + $0x178] sm:$0xff] %v267_v16  ;;  %v207_v26 = vadd.f32 %v385_v2, %v136_v19  ;;  %v140_v27 = vmul.f32 %v380_v1, %v69_v15  ;;  %v268_v29 = vmax.f32 %v204_v20, 0.0  ;;  %v208_v30 = vadd.f32 %v385_v2, %v137_v21 }
  0x2d   :  { %v209_v31 = vadd.f32 %v385_v2, %v138_v22  ;;  %v210_v32 = vadd.f32 %v385_v2, %v139_v23  ;;  %v269_v36 = vmax.f32 %v205_v24, 0.0  ;;  %v270_v37 = vmax.f32 %v206_v25, 0.0 }
  0x2e   :  { %v271_v38 = vmax.f32 %v207_v26, 0.0  ;;  %v211_v39 = vadd.f32 %v385_v2, %v140_v27  ;;  %332 = vst [vmem:[%s899_s3 + $0x180] sm:$0xff] %v268_v29  ;;  %v272_v43 = vmax.f32 %v208_v30, 0.0  ;;  %v141_v46 = vmul.f32 %v380_v1, %v70_v28 }
  0x2f   :  { %v273_v44 = vmax.f32 %v209_v31, 0.0  ;;  %v274_v45 = vmax.f32 %v210_v32, 0.0  ;;  %333 = vst [vmem:[%s899_s3 + $0x188] sm:$0xff] %v269_v36  ;;  %334 = vst [vmem:[%s899_s3 + $0x190] sm:$0xff] %v270_v37  ;;  %v142_v49 = vmul.f32 %v380_v1, %v71_v33  ;;  %v143_v50 = vmul.f32 %v380_v1, %v72_v34 }
  0x30   :  { %335 = vst [vmem:[%s899_s3 + $0x198] sm:$0xff] %v271_v38  ;;  %v275_v48 = vmax.f32 %v211_v39, 0.0  ;;  %v144_v51 = vmul.f32 %v380_v1, %v73_v35  ;;  %336 = vst [vmem:[%s899_s3 + $0x1a0] sm:$0xff] %v272_v43  ;;  %v212_v52 = vadd.f32 %v385_v2, %v141_v46  ;;  %v145_v53 = vmul.f32 %v380_v1, %v74_v40 }
  0x31   :  { %337 = vst [vmem:[%s899_s3 + $0x1a8] sm:$0xff] %v273_v44  ;;  %338 = vst [vmem:[%s899_s3 + $0x1b0] sm:$0xff] %v274_v45  ;;  %v146_v54 = vmul.f32 %v380_v1, %v75_v41  ;;  %v147_v55 = vmul.f32 %v380_v1, %v76_v42  ;;  %v213_v56 = vadd.f32 %v385_v2, %v142_v49 }
  0x32   :  { %339 = vst [vmem:[%s899_s3 + $0x1b8] sm:$0xff] %v275_v48  ;;  %v214_v57 = vadd.f32 %v385_v2, %v143_v50  ;;  %v215_v58 = vadd.f32 %v385_v2, %v144_v51  ;;  %v148_v59 = vmul.f32 %v380_v1, %v77_v47  ;;  %v276_v60 = vmax.f32 %v212_v52, 0.0 }
  0x33   :  { %v216_v61 = vadd.f32 %v385_v2, %v145_v53  ;;  %v217_v62 = vadd.f32 %v385_v2, %v146_v54  ;;  %v218_v63 = vadd.f32 %v385_v2, %v147_v55  ;;  %v277_v0 = vmax.f32 %v213_v56, 0.0 }
  0x34   :  { %v278_v3 = vmax.f32 %v214_v57, 0.0  ;;  %v279_v4 = vmax.f32 %v215_v58, 0.0  ;;  %v219_v5 = vadd.f32 %v385_v2, %v148_v59  ;;  %340 = vst [vmem:[%s899_s3 + $0x1c0] sm:$0xff] %v276_v60 }
  0x35   :  { %v280_v6 = vmax.f32 %v216_v61, 0.0  ;;  %v281_v7 = vmax.f32 %v217_v62, 0.0  ;;  %v282_v8 = vmax.f32 %v218_v63, 0.0  ;;  %341 = vst [vmem:[%s899_s3 + $0x1c8] sm:$0xff] %v277_v0 }
  0x36   :  { %342 = vst [vmem:[%s899_s3 + $0x1d0] sm:$0xff] %v278_v3  ;;  %343 = vst [vmem:[%s899_s3 + $0x1d8] sm:$0xff] %v279_v4  ;;  %v283_v1 = vmax.f32 %v219_v5, 0.0 }
  0x37   :  { %344 = vst [vmem:[%s899_s3 + $0x1e0] sm:$0xff] %v280_v6  ;;  %345 = vst [vmem:[%s899_s3 + $0x1e8] sm:$0xff] %v281_v7 }
  0x38   :  { %346 = vst [vmem:[%s899_s3 + $0x1f0] sm:$0xff] %v282_v8  ;;  %347 = vst [vmem:[%s899_s3 + $0x1f8] sm:$0xff] %v283_v1 }

// kernel: basic_conv.2
= control target key start
LH: loop header
LB: loop body
LE: loop exit
PB: predicated region body
PF: predicated region fallthrough
CT: control target
= control target key end

     0   :  { %s1645_s1 = inlined_call_operand.vmem [shape: bf16[128,128], index: 1, kind: input, shape index: {}]   ;;  %s1646_s0 = inlined_call_operand.vmem [shape: bf16[512,128], index: 0, kind: input, shape index: {}]   ;;  %s1647_s2 = inlined_call_operand.vmem [shape: f32[512,128], index: 2, kind: output, shape index: {0}]   ;;  %s1648_s3 = inlined_call_operand.vmem [shape: f32[1,8,128], index: 3, kind: output, shape index: {1}]  }
   0x1   :  { %v1078_v0 = vld [vmem:[%s1645_s1] sm:$0xff]   ;;  %v1079_v1 = vld [vmem:[%s1645_s1 + $0x8] sm:$0xff]   ;;  %v1080_v2 = vld [vmem:[%s1645_s1 + $0x10] sm:$0xff]  }
   0x2   :  { %982 = vmatprep.subr.bf16.mxu0 %v1078_v0  ;;  %1062 = vmatprep.subr.bf16.mxu1 %v1078_v0  ;;  %v1081_v3 = vld [vmem:[%s1645_s1 + $0x18] sm:$0xff]   ;;  %v1086_v4 = vld [vmem:[%s1646_s0] sm:$0xff]   ;;  %v1083_v6 = vld [vmem:[%s1645_s1 + $0x28] sm:$0xff]  }
   0x3   :  { %983 = vmatpush3.bf16.msra.mxu0 %v1078_v0  ;;  %1070 = vmatpush3.bf16.msra.mxu1 %v1078_v0  ;;  %v1082_v5 = vld [vmem:[%s1645_s1 + $0x20] sm:$0xff]   ;;  %v1084_v7 = vld [vmem:[%s1645_s1 + $0x30] sm:$0xff]   ;;  %v1085_v8 = vld [vmem:[%s1645_s1 + $0x38] sm:$0xff]  }
   0x4   :  { %984 = vmatprep.subr.bf16.mxu0 %v1079_v1  ;;  %1063 = vmatprep.subr.bf16.mxu1 %v1079_v1  ;;  %v1102_v9 = vld [vmem:[%s1646_s0 + $0x80] sm:$0xff]   ;;  %v1087_v10 = vld [vmem:[%s1646_s0 + $0x8] sm:$0xff]   ;;  %v1088_v11 = vld [vmem:[%s1646_s0 + $0x10] sm:$0xff]  }
   0x5   :  { %998 = vmatprep.mubr.bf16.mxu0 %v1086_v4  ;;  %1030 = vmatprep.mubr.bf16.mxu1 %v1102_v9  ;;  %v1103_v12 = vld [vmem:[%s1646_s0 + $0x88] sm:$0xff]   ;;  %v1104_v13 = vld [vmem:[%s1646_s0 + $0x90] sm:$0xff]   ;;  %v1089_v14 = vld [vmem:[%s1646_s0 + $0x18] sm:$0xff]  }
   0x6   :  { %v1090_v15 = vld [vmem:[%s1646_s0 + $0x20] sm:$0xff]   ;;  %v1105_v16 = vld [vmem:[%s1646_s0 + $0x98] sm:$0xff]   ;;  %v1091_v18 = vld [vmem:[%s1646_s0 + $0x28] sm:$0xff]  }
   0x7   :  { %985 = vmatpush3.bf16.msra.mxu0 %v1079_v1  ;;  %1071 = vmatpush3.bf16.msra.mxu1 %v1079_v1  ;;  %v1106_v17 = vld [vmem:[%s1646_s0 + $0xa0] sm:$0xff]   ;;  %v1107_v19 = vld [vmem:[%s1646_s0 + $0xa8] sm:$0xff]   ;;  %v1092_v20 = vld [vmem:[%s1646_s0 + $0x30] sm:$0xff]  }
   0x8   :  { %986 = vmatprep.subr.bf16.mxu0 %v1080_v2  ;;  %1064 = vmatprep.subr.bf16.mxu1 %v1080_v2  ;;  %v1108_v21 = vld [vmem:[%s1646_s0 + $0xb0] sm:$0xff]   ;;  %v1093_v22 = vld [vmem:[%s1646_s0 + $0x38] sm:$0xff]   ;;  %v1094_v24 = vld [vmem:[%s1646_s0 + $0x40] sm:$0xff]  }
   0x9   :  { %v1109_v23 = vld [vmem:[%s1646_s0 + $0xb8] sm:$0xff]   ;;  %v1110_v25 = vld [vmem:[%s1646_s0 + $0xc0] sm:$0xff]   ;;  %v1095_v26 = vld [vmem:[%s1646_s0 + $0x48] sm:$0xff]  }
   0xa   :  { %v1111_v27 = vld [vmem:[%s1646_s0 + $0xc8] sm:$0xff]   ;;  %v1096_v28 = vld [vmem:[%s1646_s0 + $0x50] sm:$0xff]   ;;  %v1097_v30 = vld [vmem:[%s1646_s0 + $0x58] sm:$0xff]  }
   0xb   :  { %987 = vmatpush3.bf16.msra.mxu0 %v1080_v2  ;;  %1072 = vmatpush3.bf16.msra.mxu1 %v1080_v2  ;;  %v1112_v29 = vld [vmem:[%s1646_s0 + $0xd0] sm:$0xff]   ;;  %v1113_v31 = vld [vmem:[%s1646_s0 + $0xd8] sm:$0xff]   ;;  %v1098_v32 = vld [vmem:[%s1646_s0 + $0x60] sm:$0xff]  }
   0xc   :  { %988 = vmatprep.subr.bf16.mxu0 %v1081_v3  ;;  %1065 = vmatprep.subr.bf16.mxu1 %v1081_v3  ;;  %v1114_v33 = vld [vmem:[%s1646_s0 + $0xe0] sm:$0xff]   ;;  %v1099_v34 = vld [vmem:[%s1646_s0 + $0x68] sm:$0xff]   ;;  %v1100_v36 = vld [vmem:[%s1646_s0 + $0x70] sm:$0xff]  }
   0xd   :  { %v1115_v35 = vld [vmem:[%s1646_s0 + $0xe8] sm:$0xff]   ;;  %v1116_v37 = vld [vmem:[%s1646_s0 + $0xf0] sm:$0xff]   ;;  %v1101_v38 = vld [vmem:[%s1646_s0 + $0x78] sm:$0xff]  }
   0xe   :  { %v1117_v39 = vld [vmem:[%s1646_s0 + $0xf8] sm:$0xff]  }
   0xf   :  { %989 = vmatpush3.bf16.msra.mxu0 %v1081_v3  ;;  %1073 = vmatpush3.bf16.msra.mxu1 %v1081_v3 }
  0x10   :  { %990 = vmatprep.subr.bf16.mxu0 %v1082_v5  ;;  %1066 = vmatprep.subr.bf16.mxu1 %v1082_v5 }
  0x13   :  { %991 = vmatpush3.bf16.msra.mxu0 %v1082_v5  ;;  %1074 = vmatpush3.bf16.msra.mxu1 %v1082_v5 }
  0x14   :  { %992 = vmatprep.subr.bf16.mxu0 %v1083_v6  ;;  %1067 = vmatprep.subr.bf16.mxu1 %v1083_v6 }
  0x17   :  { %993 = vmatpush3.bf16.msra.mxu0 %v1083_v6  ;;  %1075 = vmatpush3.bf16.msra.mxu1 %v1083_v6 }
  0x18   :  { %994 = vmatprep.subr.bf16.mxu0 %v1084_v7  ;;  %1068 = vmatprep.subr.bf16.mxu1 %v1084_v7 }
  0x1b   :  { %995 = vmatpush3.bf16.msra.mxu0 %v1084_v7  ;;  %1076 = vmatpush3.bf16.msra.mxu1 %v1084_v7 }
  0x1c   :  { %996 = vmatprep.subr.bf16.mxu0 %v1085_v8  ;;  %1069 = vmatprep.subr.bf16.mxu1 %v1085_v8 }
  0x1f   :  { %997 = vmatpush3.bf16.msra.mxu0 %v1085_v8  ;;  %1077 = vmatpush3.bf16.msra.mxu1 %v1085_v8 }
  0x22   :  { %999 = vmatmul.mubr.bf16.vlgmr.msra.gmra.mrb[0].mxu0 %v1087_v10  ;;  %1031 = vmatmul.mubr.bf16.vlgmr.msra.gmra.mrb[0].mxu1 %v1103_v12 }
  0x23   :  { %1002 = vmatprep.mubr.bf16.mxu0 %v1088_v11  ;;  %1034 = vmatprep.mubr.bf16.mxu1 %v1104_v13 }
  0x2a   :  { %1003 = vmatmul.mubr.bf16.gmra.mrb[4].mxu0 %v1089_v14  ;;  %1035 = vmatmul.mubr.bf16.gmra.mrb[4].mxu1 %v1105_v16 }
  0x2b   :  { %1006 = vmatprep.mubr.bf16.mxu0 %v1090_v15  ;;  %1038 = vmatprep.mubr.bf16.mxu1 %v1106_v17 }
  0x32   :  { %1007 = vmatmul.mubr.bf16.gmra.mrb[8].mxu0 %v1091_v18  ;;  %1039 = vmatmul.mubr.bf16.gmra.mrb[8].mxu1 %v1107_v19 }
  0x33   :  { %1010 = vmatprep.mubr.bf16.mxu0 %v1092_v20  ;;  %1042 = vmatprep.mubr.bf16.mxu1 %v1108_v21 }
  0x3a   :  { %1011 = vmatmul.mubr.bf16.gmra.mrb[12].mxu0 %v1093_v22  ;;  %1043 = vmatmul.mubr.bf16.gmra.mrb[12].mxu1 %v1109_v23 }
  0x3b   :  { %1014 = vmatprep.mubr.bf16.mxu0 %v1094_v24  ;;  %1046 = vmatprep.mubr.bf16.mxu1 %v1110_v25 }
  0x42   :  { %1015 = vmatmul.mubr.bf16.gmra.mrb[16].mxu0 %v1095_v26  ;;  %1047 = vmatmul.mubr.bf16.gmra.mrb[16].mxu1 %v1111_v27 }
  0x43   :  { %1018 = vmatprep.mubr.bf16.mxu0 %v1096_v28  ;;  %1050 = vmatprep.mubr.bf16.mxu1 %v1112_v29 }
  0x4a   :  { %1019 = vmatmul.mubr.bf16.gmra.mrb[20].mxu0 %v1097_v30  ;;  %1051 = vmatmul.mubr.bf16.gmra.mrb[20].mxu1 %v1113_v31 }
  0x4b   :  { %1022 = vmatprep.mubr.bf16.mxu0 %v1098_v32  ;;  %1054 = vmatprep.mubr.bf16.mxu1 %v1114_v33 }
  0x52   :  { %1023 = vmatmul.mubr.bf16.gmra.mrb[24].mxu0 %v1099_v34  ;;  %1055 = vmatmul.mubr.bf16.gmra.mrb[24].mxu1 %v1115_v35 }
  0x53   :  { %1026 = vmatprep.mubr.bf16.mxu0 %v1100_v36  ;;  %1058 = vmatprep.mubr.bf16.mxu1 %v1116_v37 }
  0x5a   :  { %1027 = vmatmul.mubr.bf16.gmra.mrb[28].mxu0 %v1101_v38  ;;  %1059 = vmatmul.mubr.bf16.gmra.mrb[28].mxu1 %v1117_v39 }
  0xf5   :  { %v1000_v40 = vpop.f32.mrb[0].mxu0  ;;  %v1258_v41 = vpop.f32.mrb[0].mxu1 }
  0xf6   :  { %625 = vst [vmem:[%s1647_s2 + $0x10] sm:$0xff] %v1000_v40  ;;  %v368_v42 = vpop.f32.mrb[1].mxu0  ;;  %657 = vst [vmem:[%s1647_s2 + $0x110] sm:$0xff] %v1258_v41  ;;  %v1267_v43 = vpop.f32.mrb[1].mxu1  ;;  %v758_v51 = vmul.f32 %v1000_v40, %v1000_v40 }
  0xf7   :  { %623 = vst [vmem:[%s1647_s2] sm:$0xff] %v368_v42  ;;  %v1001_v44 = vpop.f32.mrb[2].mxu0  ;;  %655 = vst [vmem:[%s1647_s2 + $0x100] sm:$0xff] %v1267_v43  ;;  %v1276_v45 = vpop.f32.mrb[2].mxu1  ;;  %v756_v48 = vmul.f32 %v368_v42, %v368_v42 }
  0xf8   :  { %626 = vst [vmem:[%s1647_s2 + $0x18] sm:$0xff] %v1001_v44  ;;  %v371_v46 = vpop.f32.mrb[3].mxu0  ;;  %658 = vst [vmem:[%s1647_s2 + $0x118] sm:$0xff] %v1276_v45  ;;  %v1285_v47 = vpop.f32.mrb[3].mxu1  ;;  %v759_v54 = vmul.f32 %v1001_v44, %v1001_v44 }
  0xf9   :  { %624 = vst [vmem:[%s1647_s2 + $0x8] sm:$0xff] %v371_v46  ;;  %v687_v49 = vadd.f32 %v371_v46, %v368_v42  ;;  %v757_v50 = vmul.f32 %v371_v46, %v371_v46  ;;  %656 = vst [vmem:[%s1647_s2 + $0x108] sm:$0xff] %v1285_v47 }
  0xfb   :  { %v688_v52 = vadd.f32 %v1000_v40, %v687_v49  ;;  %v820_v53 = vadd.f32 %v757_v50, %v756_v48 }
  0xfd   :  { %v821_v55 = vadd.f32 %v820_v53, %v758_v51  ;;  %v1004_v56 = vpop.f32.mrb[4].mxu0  ;;  %v689_v57 = vadd.f32 %v1001_v44, %v688_v52  ;;  %v1294_v58 = vpop.f32.mrb[4].mxu1 }
  0xfe   :  { %629 = vst [vmem:[%s1647_s2 + $0x30] sm:$0xff] %v1004_v56  ;;  %v384_v59 = vpop.f32.mrb[5].mxu0  ;;  %661 = vst [vmem:[%s1647_s2 + $0x130] sm:$0xff] %v1294_v58  ;;  %v1303_v60 = vpop.f32.mrb[5].mxu1  ;;  %v762_v7 = vmul.f32 %v1004_v56, %v1004_v56 }
  0xff   :  { %627 = vst [vmem:[%s1647_s2 + $0x20] sm:$0xff] %v384_v59  ;;  %v690_v61 = vadd.f32 %v689_v57, %v384_v59  ;;  %v760_v62 = vmul.f32 %v384_v59, %v384_v59  ;;  %v822_v63 = vadd.f32 %v821_v55, %v759_v54  ;;  %v1005_v0 = vpop.f32.mrb[6].mxu0  ;;  %659 = vst [vmem:[%s1647_s2 + $0x120] sm:$0xff] %v1303_v60  ;;  %v1312_v1 = vpop.f32.mrb[6].mxu1 }
 0x100   :  { %630 = vst [vmem:[%s1647_s2 + $0x38] sm:$0xff] %v1005_v0  ;;  %v387_v2 = vpop.f32.mrb[7].mxu0  ;;  %662 = vst [vmem:[%s1647_s2 + $0x138] sm:$0xff] %v1312_v1  ;;  %v1321_v3 = vpop.f32.mrb[7].mxu1  ;;  %v763_v10 = vmul.f32 %v1005_v0, %v1005_v0 }
 0x101   :  { %v823_v4 = vadd.f32 %v822_v63, %v760_v62  ;;  %628 = vst [vmem:[%s1647_s2 + $0x28] sm:$0xff] %v387_v2  ;;  %v691_v5 = vadd.f32 %v690_v61, %v387_v2  ;;  %v761_v6 = vmul.f32 %v387_v2, %v387_v2  ;;  %660 = vst [vmem:[%s1647_s2 + $0x128] sm:$0xff] %v1321_v3 }
 0x103   :  { %v692_v8 = vadd.f32 %v1004_v56, %v691_v5  ;;  %v824_v9 = vadd.f32 %v823_v4, %v761_v6 }
 0x105   :  { %v825_v11 = vadd.f32 %v824_v9, %v762_v7  ;;  %v1008_v12 = vpop.f32.mrb[8].mxu0  ;;  %v693_v13 = vadd.f32 %v1005_v0, %v692_v8  ;;  %v1330_v14 = vpop.f32.mrb[8].mxu1 }
 0x106   :  { %633 = vst [vmem:[%s1647_s2 + $0x50] sm:$0xff] %v1008_v12  ;;  %v400_v15 = vpop.f32.mrb[9].mxu0  ;;  %665 = vst [vmem:[%s1647_s2 + $0x150] sm:$0xff] %v1330_v14  ;;  %v1339_v16 = vpop.f32.mrb[9].mxu1  ;;  %v766_v27 = vmul.f32 %v1008_v12, %v1008_v12 }
 0x107   :  { %631 = vst [vmem:[%s1647_s2 + $0x40] sm:$0xff] %v400_v15  ;;  %v694_v17 = vadd.f32 %v693_v13, %v400_v15  ;;  %v764_v18 = vmul.f32 %v400_v15, %v400_v15  ;;  %v826_v19 = vadd.f32 %v825_v11, %v763_v10  ;;  %v1009_v20 = vpop.f32.mrb[10].mxu0  ;;  %663 = vst [vmem:[%s1647_s2 + $0x140] sm:$0xff] %v1339_v16  ;;  %v1348_v21 = vpop.f32.mrb[10].mxu1 }
 0x108   :  { %634 = vst [vmem:[%s1647_s2 + $0x58] sm:$0xff] %v1009_v20  ;;  %v403_v22 = vpop.f32.mrb[11].mxu0  ;;  %666 = vst [vmem:[%s1647_s2 + $0x158] sm:$0xff] %v1348_v21  ;;  %v1357_v23 = vpop.f32.mrb[11].mxu1  ;;  %v767_v30 = vmul.f32 %v1009_v20, %v1009_v20 }
 0x109   :  { %v827_v24 = vadd.f32 %v826_v19, %v764_v18  ;;  %632 = vst [vmem:[%s1647_s2 + $0x48] sm:$0xff] %v403_v22  ;;  %v695_v25 = vadd.f32 %v694_v17, %v403_v22  ;;  %v765_v26 = vmul.f32 %v403_v22, %v403_v22  ;;  %664 = vst [vmem:[%s1647_s2 + $0x148] sm:$0xff] %v1357_v23 }
 0x10b   :  { %v696_v28 = vadd.f32 %v1008_v12, %v695_v25  ;;  %v828_v29 = vadd.f32 %v827_v24, %v765_v26 }
 0x10d   :  { %v829_v31 = vadd.f32 %v828_v29, %v766_v27  ;;  %v1012_v32 = vpop.f32.mrb[12].mxu0  ;;  %v697_v33 = vadd.f32 %v1009_v20, %v696_v28  ;;  %v1366_v34 = vpop.f32.mrb[12].mxu1 }
 0x10e   :  { %637 = vst [vmem:[%s1647_s2 + $0x70] sm:$0xff] %v1012_v32  ;;  %v416_v35 = vpop.f32.mrb[13].mxu0  ;;  %669 = vst [vmem:[%s1647_s2 + $0x170] sm:$0xff] %v1366_v34  ;;  %v1375_v36 = vpop.f32.mrb[13].mxu1  ;;  %v770_v51 = vmul.f32 %v1012_v32, %v1012_v32 }
 0x10f   :  { %635 = vst [vmem:[%s1647_s2 + $0x60] sm:$0xff] %v416_v35  ;;  %v698_v37 = vadd.f32 %v697_v33, %v416_v35  ;;  %v768_v38 = vmul.f32 %v416_v35, %v416_v35  ;;  %v830_v39 = vadd.f32 %v829_v31, %v767_v30  ;;  %v1013_v40 = vpop.f32.mrb[14].mxu0  ;;  %667 = vst [vmem:[%s1647_s2 + $0x160] sm:$0xff] %v1375_v36  ;;  %v1384_v42 = vpop.f32.mrb[14].mxu1 }
 0x110   :  { %638 = vst [vmem:[%s1647_s2 + $0x78] sm:$0xff] %v1013_v40  ;;  %v419_v44 = vpop.f32.mrb[15].mxu0  ;;  %670 = vst [vmem:[%s1647_s2 + $0x178] sm:$0xff] %v1384_v42  ;;  %v1393_v46 = vpop.f32.mrb[15].mxu1  ;;  %v771_v54 = vmul.f32 %v1013_v40, %v1013_v40 }
 0x111   :  { %v831_v48 = vadd.f32 %v830_v39, %v768_v38  ;;  %636 = vst [vmem:[%s1647_s2 + $0x68] sm:$0xff] %v419_v44  ;;  %v699_v49 = vadd.f32 %v698_v37, %v419_v44  ;;  %v769_v50 = vmul.f32 %v419_v44, %v419_v44  ;;  %668 = vst [vmem:[%s1647_s2 + $0x168] sm:$0xff] %v1393_v46 }
 0x113   :  { %v700_v52 = vadd.f32 %v1012_v32, %v699_v49  ;;  %v832_v53 = vadd.f32 %v831_v48, %v769_v50 }
 0x115   :  { %v833_v55 = vadd.f32 %v832_v53, %v770_v51  ;;  %v1016_v56 = vpop.f32.mrb[16].mxu0  ;;  %v701_v57 = vadd.f32 %v1013_v40, %v700_v52  ;;  %v1402_v59 = vpop.f32.mrb[16].mxu1 }
 0x116   :  { %641 = vst [vmem:[%s1647_s2 + $0x90] sm:$0xff] %v1016_v56  ;;  %v432_v61 = vpop.f32.mrb[17].mxu0  ;;  %673 = vst [vmem:[%s1647_s2 + $0x190] sm:$0xff] %v1402_v59  ;;  %v1411_v62 = vpop.f32.mrb[17].mxu1  ;;  %v774_v11 = vmul.f32 %v1016_v56, %v1016_v56 }
 0x117   :  { %639 = vst [vmem:[%s1647_s2 + $0x80] sm:$0xff] %v432_v61  ;;  %v702_v63 = vadd.f32 %v701_v57, %v432_v61  ;;  %v772_v0 = vmul.f32 %v432_v61, %v432_v61  ;;  %v834_v2 = vadd.f32 %v833_v55, %v771_v54  ;;  %v1017_v4 = vpop.f32.mrb[18].mxu0  ;;  %671 = vst [vmem:[%s1647_s2 + $0x180] sm:$0xff] %v1411_v62  ;;  %v1420_v5 = vpop.f32.mrb[18].mxu1 }
 0x118   :  { %642 = vst [vmem:[%s1647_s2 + $0x98] sm:$0xff] %v1017_v4  ;;  %v435_v6 = vpop.f32.mrb[19].mxu0  ;;  %674 = vst [vmem:[%s1647_s2 + $0x198] sm:$0xff] %v1420_v5  ;;  %v1429_v7 = vpop.f32.mrb[19].mxu1  ;;  %v775_v15 = vmul.f32 %v1017_v4, %v1017_v4 }
 0x119   :  { %v835_v8 = vadd.f32 %v834_v2, %v772_v0  ;;  %640 = vst [vmem:[%s1647_s2 + $0x88] sm:$0xff] %v435_v6  ;;  %v703_v9 = vadd.f32 %v702_v63, %v435_v6  ;;  %v773_v10 = vmul.f32 %v435_v6, %v435_v6  ;;  %672 = vst [vmem:[%s1647_s2 + $0x188] sm:$0xff] %v1429_v7 }
 0x11b   :  { %v704_v12 = vadd.f32 %v1016_v56, %v703_v9  ;;  %v836_v13 = vadd.f32 %v835_v8, %v773_v10 }
 0x11d   :  { %v837_v17 = vadd.f32 %v836_v13, %v774_v11  ;;  %v1020_v18 = vpop.f32.mrb[20].mxu0  ;;  %v705_v19 = vadd.f32 %v1017_v4, %v704_v12  ;;  %v1438_v20 = vpop.f32.mrb[20].mxu1 }
 0x11e   :  { %645 = vst [vmem:[%s1647_s2 + $0xb0] sm:$0xff] %v1020_v18  ;;  %v448_v22 = vpop.f32.mrb[21].mxu0  ;;  %677 = vst [vmem:[%s1647_s2 + $0x1b0] sm:$0xff] %v1438_v20  ;;  %v1447_v24 = vpop.f32.mrb[21].mxu1  ;;  %v778_v37 = vmul.f32 %v1020_v18, %v1020_v18 }
 0x11f   :  { %643 = vst [vmem:[%s1647_s2 + $0xa0] sm:$0xff] %v448_v22  ;;  %v706_v25 = vadd.f32 %v705_v19, %v448_v22  ;;  %v776_v26 = vmul.f32 %v448_v22, %v448_v22  ;;  %v838_v27 = vadd.f32 %v837_v17, %v775_v15  ;;  %v1021_v28 = vpop.f32.mrb[22].mxu0  ;;  %675 = vst [vmem:[%s1647_s2 + $0x1a0] sm:$0xff] %v1447_v24  ;;  %v1456_v29 = vpop.f32.mrb[22].mxu1 }
 0x120   :  { %646 = vst [vmem:[%s1647_s2 + $0xb8] sm:$0xff] %v1021_v28  ;;  %v451_v30 = vpop.f32.mrb[23].mxu0  ;;  %678 = vst [vmem:[%s1647_s2 + $0x1b8] sm:$0xff] %v1456_v29  ;;  %v1465_v31 = vpop.f32.mrb[23].mxu1  ;;  %v779_v40 = vmul.f32 %v1021_v28, %v1021_v28 }
 0x121   :  { %v839_v32 = vadd.f32 %v838_v27, %v776_v26  ;;  %644 = vst [vmem:[%s1647_s2 + $0xa8] sm:$0xff] %v451_v30  ;;  %v707_v33 = vadd.f32 %v706_v25, %v451_v30  ;;  %v777_v35 = vmul.f32 %v451_v30, %v451_v30  ;;  %676 = vst [vmem:[%s1647_s2 + $0x1a8] sm:$0xff] %v1465_v31 }
 0x123   :  { %v708_v38 = vadd.f32 %v1020_v18, %v707_v33  ;;  %v840_v39 = vadd.f32 %v839_v32, %v777_v35 }
 0x125   :  { %v841_v44 = vadd.f32 %v840_v39, %v778_v37  ;;  %v1024_v48 = vpop.f32.mrb[24].mxu0  ;;  %v709_v49 = vadd.f32 %v1021_v28, %v708_v38  ;;  %v1474_v50 = vpop.f32.mrb[24].mxu1 }
 0x126   :  { %649 = vst [vmem:[%s1647_s2 + $0xd0] sm:$0xff] %v1024_v48  ;;  %v464_v51 = vpop.f32.mrb[25].mxu0  ;;  %681 = vst [vmem:[%s1647_s2 + $0x1d0] sm:$0xff] %v1474_v50  ;;  %v1483_v52 = vpop.f32.mrb[25].mxu1  ;;  %v782_v6 = vmul.f32 %v1024_v48, %v1024_v48 }
 0x127   :  { %647 = vst [vmem:[%s1647_s2 + $0xc0] sm:$0xff] %v464_v51  ;;  %v710_v53 = vadd.f32 %v709_v49, %v464_v51  ;;  %v780_v54 = vmul.f32 %v464_v51, %v464_v51  ;;  %v842_v55 = vadd.f32 %v841_v44, %v779_v40  ;;  %v1025_v56 = vpop.f32.mrb[26].mxu0  ;;  %679 = vst [vmem:[%s1647_s2 + $0x1c0] sm:$0xff] %v1483_v52  ;;  %v1492_v57 = vpop.f32.mrb[26].mxu1 }
 0x128   :  { %650 = vst [vmem:[%s1647_s2 + $0xd8] sm:$0xff] %v1025_v56  ;;  %v467_v61 = vpop.f32.mrb[27].mxu0  ;;  %682 = vst [vmem:[%s1647_s2 + $0x1d8] sm:$0xff] %v1492_v57  ;;  %v1501_v63 = vpop.f32.mrb[27].mxu1  ;;  %v783_v10 = vmul.f32 %v1025_v56, %v1025_v56  ;;  %v788_v49 = vmul.f32 %v1267_v43, %v1267_v43 }
 0x129   :  { %v843_v0 = vadd.f32 %v842_v55, %v780_v54  ;;  %648 = vst [vmem:[%s1647_s2 + $0xc8] sm:$0xff] %v467_v61  ;;  %v711_v2 = vadd.f32 %v710_v53, %v467_v61  ;;  %v781_v4 = vmul.f32 %v467_v61, %v467_v61  ;;  %680 = vst [vmem:[%s1647_s2 + $0x1c8] sm:$0xff] %v1501_v63 }
 0x12a   :  { %v790_v61 = vmul.f32 %v1258_v41, %v1258_v41 }
 0x12b   :  { %v712_v8 = vadd.f32 %v1024_v48, %v711_v2  ;;  %v844_v9 = vadd.f32 %v843_v0, %v781_v4  ;;  %v791_v4 = vmul.f32 %v1276_v45, %v1276_v45 }
 0x12d   :  { %v845_v11 = vadd.f32 %v844_v9, %v782_v6  ;;  %v1028_v12 = vpop.f32.mrb[28].mxu0  ;;  %v713_v13 = vadd.f32 %v1025_v56, %v712_v8  ;;  %v1510_v15 = vpop.f32.mrb[28].mxu1  ;;  %v789_v56 = vmul.f32 %v1285_v47, %v1285_v47 }
 0x12e   :  { %653 = vst [vmem:[%s1647_s2 + $0xf0] sm:$0xff] %v1028_v12  ;;  %v480_v17 = vpop.f32.mrb[29].mxu0  ;;  %685 = vst [vmem:[%s1647_s2 + $0x1f0] sm:$0xff] %v1510_v15  ;;  %v1519_v18 = vpop.f32.mrb[29].mxu1  ;;  %v786_v37 = vmul.f32 %v1028_v12, %v1028_v12 }
 0x12f   :  { %651 = vst [vmem:[%s1647_s2 + $0xe0] sm:$0xff] %v480_v17  ;;  %v714_v19 = vadd.f32 %v713_v13, %v480_v17  ;;  %v784_v22 = vmul.f32 %v480_v17, %v480_v17  ;;  %v846_v25 = vadd.f32 %v845_v11, %v783_v10  ;;  %v1029_v26 = vpop.f32.mrb[30].mxu0  ;;  %683 = vst [vmem:[%s1647_s2 + $0x1e0] sm:$0xff] %v1519_v18  ;;  %v1528_v27 = vpop.f32.mrb[30].mxu1 }
 0x130   :  { %654 = vst [vmem:[%s1647_s2 + $0xf8] sm:$0xff] %v1029_v26  ;;  %v483_v28 = vpop.f32.mrb[31].mxu0  ;;  %686 = vst [vmem:[%s1647_s2 + $0x1f8] sm:$0xff] %v1528_v27  ;;  %v1537_v30 = vpop.f32.mrb[31].mxu1  ;;  %v787_v40 = vmul.f32 %v1029_v26, %v1029_v26 }
 0x131   :  { %v847_v32 = vadd.f32 %v846_v25, %v784_v22  ;;  %652 = vst [vmem:[%s1647_s2 + $0xe8] sm:$0xff] %v483_v28  ;;  %v715_v33 = vadd.f32 %v714_v19, %v483_v28  ;;  %v785_v35 = vmul.f32 %v483_v28, %v483_v28  ;;  %684 = vst [vmem:[%s1647_s2 + $0x1e8] sm:$0xff] %v1537_v30 }
 0x133   :  { %v716_v38 = vadd.f32 %v1028_v12, %v715_v33  ;;  %v848_v39 = vadd.f32 %v847_v32, %v785_v35  ;;  %v793_v12 = vmul.f32 %v1321_v3, %v1321_v3  ;;  %v797_v32 = vmul.f32 %v1357_v23, %v1357_v23 }
 0x135   :  { %v849_v44 = vadd.f32 %v848_v39, %v786_v37  ;;  %v717_v48 = vadd.f32 %v1029_v26, %v716_v38 }
 0x137   :  { %v718_v51 = vadd.f32 %v717_v48, %v1267_v43  ;;  %v850_v53 = vadd.f32 %v849_v44, %v787_v40  ;;  %v792_v43 = vmul.f32 %v1303_v60, %v1303_v60  ;;  %v801_v48 = vmul.f32 %v1393_v46, %v1393_v46 }
 0x139   :  { %v851_v54 = vadd.f32 %v850_v53, %v788_v49  ;;  %v719_v55 = vadd.f32 %v718_v51, %v1285_v47 }
 0x13b   :  { %v720_v0 = vadd.f32 %v1258_v41, %v719_v55  ;;  %v852_v2 = vadd.f32 %v851_v54, %v789_v56  ;;  %v794_v41 = vmul.f32 %v1294_v58, %v1294_v58 }
 0x13d   :  { %v853_v6 = vadd.f32 %v852_v2, %v790_v61  ;;  %v721_v8 = vadd.f32 %v1276_v45, %v720_v0  ;;  %v795_v45 = vmul.f32 %v1312_v1, %v1312_v1  ;;  %v805_v0 = vmul.f32 %v1429_v7, %v1429_v7 }
 0x13f   :  { %v722_v9 = vadd.f32 %v721_v8, %v1303_v60  ;;  %v854_v10 = vadd.f32 %v853_v6, %v791_v4  ;;  %v796_v60 = vmul.f32 %v1339_v16, %v1339_v16 }
 0x141   :  { %v855_v11 = vadd.f32 %v854_v10, %v792_v43  ;;  %v723_v47 = vadd.f32 %v722_v9, %v1321_v3 }
 0x143   :  { %v724_v13 = vadd.f32 %v1294_v58, %v723_v47  ;;  %v856_v17 = vadd.f32 %v855_v11, %v793_v12  ;;  %v798_v58 = vmul.f32 %v1330_v14, %v1330_v14  ;;  %v809_v11 = vmul.f32 %v1465_v31, %v1465_v31 }
 0x145   :  { %v857_v19 = vadd.f32 %v856_v17, %v794_v41  ;;  %v725_v22 = vadd.f32 %v1312_v1, %v724_v13  ;;  %v799_v1 = vmul.f32 %v1348_v21, %v1348_v21 }
 0x147   :  { %v726_v25 = vadd.f32 %v725_v22, %v1339_v16  ;;  %v858_v26 = vadd.f32 %v857_v19, %v795_v45  ;;  %v800_v16 = vmul.f32 %v1375_v36, %v1375_v36  ;;  %v813_v22 = vmul.f32 %v1501_v63, %v1501_v63 }
 0x149   :  { %v859_v28 = vadd.f32 %v858_v26, %v796_v60  ;;  %v727_v3 = vadd.f32 %v726_v25, %v1357_v23 }
 0x14b   :  { %v728_v33 = vadd.f32 %v1330_v14, %v727_v3  ;;  %v860_v35 = vadd.f32 %v859_v28, %v797_v32  ;;  %v802_v14 = vmul.f32 %v1366_v34, %v1366_v34 }
 0x14d   :  { %v861_v37 = vadd.f32 %v860_v35, %v798_v58  ;;  %v729_v38 = vadd.f32 %v1348_v21, %v728_v33  ;;  %v803_v21 = vmul.f32 %v1384_v42, %v1384_v42  ;;  %v817_v33 = vmul.f32 %v1537_v30, %v1537_v30 }
 0x14f   :  { %v730_v39 = vadd.f32 %v729_v38, %v1375_v36  ;;  %v862_v40 = vadd.f32 %v861_v37, %v799_v1  ;;  %v804_v36 = vmul.f32 %v1411_v62, %v1411_v62 }
 0x151   :  { %v863_v44 = vadd.f32 %v862_v40, %v800_v16  ;;  %v731_v23 = vadd.f32 %v730_v39, %v1393_v46 }
 0x153   :  { %v732_v49 = vadd.f32 %v1366_v34, %v731_v23  ;;  %v864_v51 = vadd.f32 %v863_v44, %v801_v48  ;;  %v806_v34 = vmul.f32 %v1402_v59, %v1402_v59  ;;  %v889_v44 = vlaneseq }
 0x155   :  { %v865_v53 = vadd.f32 %v864_v51, %v802_v14  ;;  %v733_v54 = vadd.f32 %v1384_v42, %v732_v49  ;;  %v807_v42 = vmul.f32 %v1420_v5, %v1420_v5  ;;  %v890_v49 = vshrl.u32 %v889_v44, 7 }
 0x157   :  { %v734_v55 = vadd.f32 %v733_v54, %v1411_v62  ;;  %v866_v56 = vadd.f32 %v865_v53, %v803_v21  ;;  %v808_v62 = vmul.f32 %v1447_v24, %v1447_v24  ;;  %vm891_vm0 = vcmp.eq.s32.totalorder %v890_v49, 0 }
 0x159   :  { %v867_v61 = vadd.f32 %v866_v56, %v804_v36  ;;  %v735_v46 = vadd.f32 %v734_v55, %v1429_v7 }
 0x15b   :  { %v736_v2 = vadd.f32 %v1402_v59, %v735_v46  ;;  %v868_v4 = vadd.f32 %v867_v61, %v805_v0  ;;  %v810_v59 = vmul.f32 %v1438_v20, %v1438_v20 }
 0x15d   :  { %v869_v6 = vadd.f32 %v868_v4, %v806_v34  ;;  %v737_v8 = vadd.f32 %v1420_v5, %v736_v2  ;;  %v811_v5 = vmul.f32 %v1456_v29, %v1456_v29 }
 0x15f   :  { %v738_v43 = vadd.f32 %v737_v8, %v1447_v24  ;;  %v870_v9 = vadd.f32 %v869_v6, %v807_v42  ;;  %v812_v24 = vmul.f32 %v1483_v52, %v1483_v52 }
 0x161   :  { %v871_v10 = vadd.f32 %v870_v9, %v808_v62  ;;  %v739_v7 = vadd.f32 %v738_v43, %v1465_v31 }
 0x163   :  { %v740_v47 = vadd.f32 %v1438_v20, %v739_v7  ;;  %v872_v12 = vadd.f32 %v871_v10, %v809_v11  ;;  %v814_v20 = vmul.f32 %v1474_v50, %v1474_v50 }
 0x165   :  { %v873_v41 = vadd.f32 %v872_v12, %v810_v59  ;;  %v741_v13 = vadd.f32 %v1456_v29, %v740_v47  ;;  %v815_v29 = vmul.f32 %v1492_v57, %v1492_v57 }
 0x167   :  { %v742_v17 = vadd.f32 %v741_v13, %v1483_v52  ;;  %v874_v45 = vadd.f32 %v873_v41, %v811_v5  ;;  %v816_v52 = vmul.f32 %v1519_v18, %v1519_v18 }
 0x169   :  { %v875_v19 = vadd.f32 %v874_v45, %v812_v24  ;;  %v743_v31 = vadd.f32 %v742_v17, %v1501_v63 }
 0x16b   :  { %v744_v60 = vadd.f32 %v1474_v50, %v743_v31  ;;  %v876_v25 = vadd.f32 %v875_v19, %v813_v22  ;;  %v818_v50 = vmul.f32 %v1510_v15, %v1510_v15 }
 0x16d   :  { %v877_v26 = vadd.f32 %v876_v25, %v814_v20  ;;  %v745_v28 = vadd.f32 %v1492_v57, %v744_v60  ;;  %v819_v57 = vmul.f32 %v1528_v27, %v1528_v27 }
 0x16f   :  { %v746_v3 = vadd.f32 %v745_v28, %v1519_v18  ;;  %v878_v32 = vadd.f32 %v877_v26, %v815_v29 }
 0x171   :  { %v879_v58 = vadd.f32 %v878_v32, %v816_v52  ;;  %v747_v63 = vadd.f32 %v746_v3, %v1537_v30 }
 0x173   :  { %v748_v35 = vadd.f32 %v1510_v15, %v747_v63  ;;  %v880_v1 = vadd.f32 %v879_v58, %v817_v33 }
 0x175   :  { %v749_v37 = vadd.f32 %v1528_v27, %v748_v35  ;;  %v881_v38 = vadd.f32 %v880_v1, %v818_v50 }
 0x177   :  { %v750_v18 = vrot.slane %v749_v37, 4  ;;  %v882_v16 = vadd.f32 %v881_v38, %v819_v57 }
 0x179   :  { %v751_v39 = vadd.f32 %v750_v18, %v749_v37  ;;  %v883_v40 = vrot.slane %v882_v16, 4 }
 0x17b   :  { %v752_v23 = vrot.slane %v751_v39, 2  ;;  %v884_v48 = vadd.f32 %v883_v40, %v882_v16 }
 0x17d   :  { %v753_v30 = vadd.f32 %v752_v23, %v751_v39  ;;  %v885_v14 = vrot.slane %v884_v48, 2 }
 0x17f   :  { %v754_v51 = vrot.slane %v753_v30, 1  ;;  %v886_v21 = vadd.f32 %v885_v14, %v884_v48 }
 0x181   :  { %v887_v15 = vrot.slane %v886_v21, 1  ;;  %v755_v53 = vadd.f32 %v754_v51, %v753_v30 }
 0x183   :  { %v888_v54 = vadd.f32 %v887_v15, %v886_v21 }
 0x185   :  { %v892_v36 = vsel %vm891_vm0, %v755_v53, %v888_v54 }
 0x186   :  { %893 = vst [vmem:[%s1648_s3] sm:$0xff] %v892_v36 }

</bundles_post_ra>
